<compile_context>
chip_gen: v6e
topology: v6e:2x2x1
jax: 0.10.0
libtpu: 0.0.40
codegen_flags: <defaults>
</compile_context>

<pallas_src>
import numpy as np
import jax
import jax.numpy as jnp
from jax.experimental import pallas as pl
from jax.experimental.pallas import tpu as pltpu


def _round_up(x, m):
    return ((x + m - 1) // m) * m


def _make_sum_sq_kernel(mean, inv_std):
    mean_f = float(mean)
    inv_std_f = float(inv_std)

    def kernel(z_ref, out_ref):
        j = pl.program_id(1)

        # Output block is resident across the feature (reduction) axis:
        # zero it on the first feature tile of each batch tile.
        @pl.when(j == 0)
        def _():
            out_ref[...] = jnp.zeros_like(out_ref)

        # Widen in-register; HBM traffic stays at the native dtype width.
        z = z_ref[...].astype(jnp.float32)                 # (TB, tile_d)
        u = (z - mean_f) * inv_std_f
        out_ref[...] += jnp.sum(u * u, axis=-1, keepdims=True)  # (TB, 1)

    return kernel


def realnvp_loss(z, sldj, distribution_mean=0.0, distribution_std=1.0, k=256):
    """NLL loss for RealNVP computed with a Pallas TPU kernel. Returns scalar."""
    b = z.shape[0]
    d_total = int(np.prod(z.shape[1:]))
    mean = float(distribution_mean)
    std = float(distribution_std)
    inv_std = 1.0 / std
    log_const = float(np.log(std * np.sqrt(2.0 * np.pi)))
    log_k = float(np.log(k))

    # Flatten to (B, D) in native dtype (no forced f32 upcast).
    z_flat = z.reshape(b, d_total)
    dtype_size = jnp.dtype(z_flat.dtype).itemsize

    # --- tile selection -----------------------------------------------------
    # Batch tile: one full set of 8 sublanes.  Batch axis is the parallel grid
    # axis, so VMEM usage is independent of B.
    tb = 8
    # Feature tile: lane-dense, capped so one buffer stays small enough to
    # double-buffer comfortably inside every generation's scoped VMEM
    # (v5e 16 MiB, v7x 32 MiB scoped / 64 MiB physical).
    per_buffer_cap = 2 * 1024 * 1024  # bytes per z buffer (x2 for pipelining)
    max_tile_d = max(128, min(16384,
                              (per_buffer_cap // (tb * dtype_size)) // 128 * 128))
    d_pad128 = _round_up(d_total, 128)
    tile_d = min(d_pad128, max_tile_d)

    b_pad = _round_up(b, tb)
    d_pad = _round_up(d_total, tile_d)

    # Pad with the distribution mean so padded elements contribute exactly 0
    # to sum((z-mean)/std)^2.  (No full-D fallback block; always tile.)
    if (b_pad, d_pad) != (b, d_total):
        z_flat = jnp.pad(z_flat, ((0, b_pad - b), (0, d_pad - d_total)),
                         constant_values=mean)

    grid = (b_pad // tb, d_pad // tile_d)

    sum_sq = pl.pallas_call(
        _make_sum_sq_kernel(mean, inv_std),
        out_shape=jax.ShapeDtypeStruct((b_pad, 1), jnp.float32),
        grid_spec=pltpu.PrefetchScalarGridSpec(
            num_scalar_prefetch=0,
            grid=grid,
            in_specs=[pl.BlockSpec((tb, tile_d), lambda i, j: (i, j))],
            # Same output block for every j -> resident accumulator per batch tile.
            out_specs=pl.BlockSpec((tb, 1), lambda i, j: (i, 0)),
        ),
        compiler_params=pltpu.CompilerParams(
            dimension_semantics=("parallel", "arbitrary")),
    )(z_flat)

    # --- O(B) finalize in plain JAX (uses the TRUE d_total and TRUE b) ------
    sum_sq = sum_sq[:b, 0]                                   # (B,)
    prior_ll = -0.5 * sum_sq - d_total * log_const - log_k * d_total
    ll = prior_ll + sldj.reshape(b).astype(jnp.float32)
    return -jnp.mean(ll)


def realnvp_loss_ref(z, sldj, mean=0.0, std=1.0, k=256):
    """Pure-JAX reference (mirrors the PyTorch forward)."""
    prior_ll = -0.5 * ((z - mean) / std) ** 2 - np.log(std * np.sqrt(2 * np.pi))
    prior_ll = prior_ll.reshape(z.shape[0], -1).sum(-1) \
        - np.log(k) * np.prod(z.shape[1:])
    ll = prior_ll + sldj
    return -ll.mean()


if __name__ == "__main__":
    key = jax.random.PRNGKey(0)
    kz, ks = jax.random.split(key)
    # z is the latent output of RealNVP (NCHW); sldj is sum-log-det-jacobian (B,)
    z = jax.random.normal(kz, (2, 4, 16, 16), dtype=jnp.float32)
    sldj = jax.random.normal(ks, (2,), dtype=jnp.float32)

    nll = realnvp_loss(z, sldj, distribution_mean=0.0, distribution_std=1.0, k=256)
    nll = jax.block_until_ready(nll)

    ref = realnvp_loss_ref(z, sldj)
    assert jnp.allclose(nll, ref, rtol=1e-5, atol=1e-5), (nll, ref)

    # Also exercise a non-divisible / bf16 shape to validate padding + native
    # dtype paths (compared against an f32 reference of the same bf16 values).
    kz2, ks2 = jax.random.split(ks)
    z2 = jax.random.normal(kz2, (3, 3, 10, 10), dtype=jnp.float32).astype(jnp.bfloat16)
    sldj2 = jax.random.normal(ks2, (3,), dtype=jnp.float32)
    nll2 = jax.block_until_ready(
        realnvp_loss(z2, sldj2, distribution_mean=0.1, distribution_std=1.5, k=256))
    ref2 = realnvp_loss_ref(z2.astype(jnp.float32), sldj2, mean=0.1, std=1.5, k=256)
    assert jnp.allclose(nll2, ref2, rtol=1e-3, atol=1e-3), (nll2, ref2)

    print("KERNEL_OK")
</pallas_src>

<mosaic_0001>
module attributes {stable_mosaic.version = 11 : i64} {
  func.func @kernel(%arg0: i32, %arg1: i32, %arg2: memref<8x1024xf32, #tpu.memory_space<vmem>>, %arg3: memref<8x1xf32, #tpu.memory_space<vmem>>) attributes {dimension_semantics = [#tpu.dimension_semantics<parallel>, #tpu.dimension_semantics<arbitrary>], iteration_bounds = array<i64: 1, 1>, scalar_prefetch = 0 : i64, scratch_operands = 0 : i64, tpu.core_type = #tpu.core_type<tc>, window_params = [{transform_indices = @transform_0, window_bounds = array<i64: 8, 1024>}, {transform_indices = @transform_1, window_bounds = array<i64: 8, 1>}]} {
    %c0_i32 = arith.constant 0 : i32
    %0 = arith.cmpi eq, %arg1, %c0_i32 : i32
    %1 = arith.extui %0 : i1 to i32
    %c0_i32_0 = arith.constant 0 : i32
    %2 = arith.cmpi ne, %1, %c0_i32_0 : i32
    scf.if %2 {
      %cst_8 = arith.constant 0.000000e+00 : f32
      %14 = vector.broadcast %cst_8 : f32 to vector<8x1xf32>
      %c0_9 = arith.constant 0 : index
      %c0_10 = arith.constant 0 : index
      %15 = vector.load %arg3[%c0_9, %c0_10] : memref<8x1xf32, #tpu.memory_space<vmem>>, vector<8x1xf32>
      tpu.vector_store %arg3[%c0_9, %c0_10], %14 {strides = array<i32>} : memref<8x1xf32, #tpu.memory_space<vmem>>, vector<8x1xf32>,
    } else {
    }
    %c0 = arith.constant 0 : index
    %c0_1 = arith.constant 0 : index
    %3 = vector.load %arg2[%c0, %c0_1] : memref<8x1024xf32, #tpu.memory_space<vmem>>, vector<8x1024xf32>
    %cst = arith.constant 0.000000e+00 : f32
    %4 = vector.broadcast %cst : f32 to vector<8x1024xf32>
    %5 = arith.subf %3, %4 : vector<8x1024xf32>
    %cst_2 = arith.constant 1.000000e+00 : f32
    %6 = vector.broadcast %cst_2 : f32 to vector<8x1024xf32>
    %7 = arith.mulf %5, %6 : vector<8x1024xf32>
    %c0_3 = arith.constant 0 : index
    %c0_4 = arith.constant 0 : index
    %8 = vector.load %arg3[%c0_3, %c0_4] : memref<8x1xf32, #tpu.memory_space<vmem>>, vector<8x1xf32>
    %9 = arith.mulf %7, %7 : vector<8x1024xf32>
    %cst_5 = arith.constant dense<0.000000e+00> : vector<8xf32>
    %10 = vector.multi_reduction <add>, %9, %cst_5 [1] : vector<8x1024xf32> to vector<8xf32>
    %11 = vector.shape_cast %10 : vector<8xf32> to vector<8x1xf32>
    %12 = arith.addf %8, %11 : vector<8x1xf32>
    %c0_6 = arith.constant 0 : index
    %c0_7 = arith.constant 0 : index
    %13 = vector.load %arg3[%c0_6, %c0_7] : memref<8x1xf32, #tpu.memory_space<vmem>>, vector<8x1xf32>
    tpu.vector_store %arg3[%c0_6, %c0_7], %12 {strides = array<i32>} : memref<8x1xf32, #tpu.memory_space<vmem>>, vector<8x1xf32>,
    return
  }
  func.func @transform_0(%arg0: i32, %arg1: i32) -> (i32, i32) {
    %c0_i32 = arith.constant 0 : i32
    return %arg0, %arg1 : i32, i32
  }
  func.func @transform_1(%arg0: i32, %arg1: i32) -> (i32, i32) {
    %c0_i32 = arith.constant 0 : i32
    %c0_i32_0 = arith.constant 0 : i32
    return %arg0, %c0_i32 : i32, i32
  }
}

</mosaic_0001>

<bundles_post_ra>
// kernel: tpu_custom_call.1
= control target key start
LH: loop header
LB: loop body
LE: loop exit
PB: predicated region body
PF: predicated region fallthrough
CT: control target
= control target key end

     0   :  { %6 = vsyncpa [#allocation3], 0  ;;  %s84_s6 = smov [#allocation2]   ;;  %s110_s0 = inlined_call_operand.hbm [shape: f32[8,1024], index: 0, kind: input, shape index: {}]   ;;  %s111_s1 = inlined_call_operand.vmem [shape: f32[8,1], index: 1, kind: output, shape index: {}]  }
   0x1   :  { %s13_s7 = sshll.u32 %s84_s6, 4  ;;  %s14_s7 = int_to_ptr.vmem [resolvable:$true] %s13_s7 }
   0x2   :  { %s70_s8 = scalar_lea.vmem %s14_s7, 1024  ;;  %p75_p1 = scmp.lt.s32.totalorder %s14_s7, %s14_s7 }
   0x3   :  { %p71_p0 = scmp.ne.s32.totalorder %s14_s7, %s70_s8  ;;  %p76_p2 = scmp.lt.s32.totalorder %s70_s8, %s70_s8 }
   0x5   :  { %p77_p3 = por %p76_p2, %p75_p1 }
   0x7   :  { %p78_p4 = pnand %p77_p3, %p71_p0 }
   0x9   :  { %81 = shalt.err (!%p78_p4)
}
   0xa   :  { %16 = dma.hbm_to_vmem [thread:$0]  %s110_s0, 1024, %s14_s7, [#allocation3]  }
   0xb   :  { %82 = dma.done.wait [#allocation3], 1024  }
   0xc   :  { %83 = vsyncadd [#allocation3], 4294966272  ;;  %vm24_vm0 = vcmask 7168   ;;  %v85_v0 = vmov 0.0   ;;  %v26_v1 = vld [vmem:[#allocation2] sm:$0xff]  ;;  %v27_v2 = vld [vmem:[#allocation2 + $0x8] sm:$0xff] }
   0xd   :  { %25 = vst.msk [vmem:[%s111_s1] sm:$0xff] %vm24_vm0, %v85_v0  ;;  %v28_v3 = vld [vmem:[#allocation2 + $0x10] sm:$0xff]  ;;  %v29_v4 = vld [vmem:[#allocation2 + $0x18] sm:$0xff]  ;;  %v35_v5 = vmul.f32 %v26_v1, %v26_v1  ;;  %v36_v6 = vmul.f32 %v27_v2, %v27_v2  ;;  %v30_v8 = vld [vmem:[#allocation2 + $0x20] sm:$0xff] }
   0xe   :  { %v37_v7 = vmul.f32 %v28_v3, %v28_v3  ;;  %v38_v9 = vmul.f32 %v29_v4, %v29_v4  ;;  %v31_v11 = vld [vmem:[#allocation2 + $0x28] sm:$0xff]  ;;  %v39_v12 = vmul.f32 %v30_v8, %v30_v8  ;;  %v32_v14 = vld [vmem:[#allocation2 + $0x30] sm:$0xff]  ;;  %v33_v17 = vld [vmem:[#allocation2 + $0x38] sm:$0xff] }
   0xf   :  { %v43_v10 = vadd.f32 %v36_v6, %v35_v5  ;;  %v40_v15 = vmul.f32 %v31_v11, %v31_v11  ;;  %v41_v18 = vmul.f32 %v32_v14, %v32_v14  ;;  %v42_v20 = vmul.f32 %v33_v17, %v33_v17 }
  0x11   :  { %v44_v13 = vadd.f32 %v43_v10, %v37_v7 }
  0x13   :  { %v45_v16 = vadd.f32 %v44_v13, %v38_v9 }
  0x14   :  { %v34_v24 = vld [vmem:[%s111_s1] sm:$0xff] }
  0x15   :  { %v46_v19 = vadd.f32 %v45_v16, %v39_v12 }
  0x17   :  { %v47_v21 = vadd.f32 %v46_v19, %v40_v15 }
  0x19   :  { %v48_v22 = vadd.f32 %v47_v21, %v41_v18 }
  0x1b   :  { %v49_v23 = vadd.f32 %v48_v22, %v42_v20 }
  0x1d   :  { %50 = vadd.xlane.f32.xlu0 %v49_v23 }
  0xa6   :  { %v51_v25 = vpop.xlane.xlu0 %50 }
  0xa7   :  { %v52_v26 = vadd.f32 %v51_v25, %v34_v24 }
  0xa9   :  { %54 = vst.msk [vmem:[%s111_s1] sm:$0xff] %vm24_vm0, %v52_v26 }
  0xaa   :  { %59 = vsyncpa [#allocation3], 1 }

</bundles_post_ra>
